<compile_context>
chip_gen: v5e
topology: v5e:2x2
jax: 0.10.0
libtpu: 0.0.40
codegen_flags: <defaults>
</compile_context>

<pallas_src>
import jax
import jax.numpy as jnp
from jax.experimental import pallas as pl
from jax.experimental.pallas import tpu as pltpu


def _round_up(x, m):
    return ((x + m - 1) // m) * m


def decoder_forward_kernel(x_ref, wd_ref, bd_ref, wp_ref, bp_ref, o_ref):
    # decode: Linear(H->H) + tanh.  x streamed as f32; bf16 cast happens here
    # (VPU slots, hidden under the MXU), accumulate in f32 on the MXU.
    x_bf16 = x_ref[...].astype(jnp.bfloat16)
    h = jnp.dot(x_bf16, wd_ref[...], preferred_element_type=jnp.float32)
    h = jnp.tanh(h + bd_ref[...])  # f32 epilogue: VPU bias add + EUP tanh
    # project: Linear(H->O), bf16 operands / f32 accumulate.
    y = jnp.dot(h.astype(jnp.bfloat16), wp_ref[...],
                preferred_element_type=jnp.float32)
    o_ref[...] = (y + bp_ref[...]).astype(o_ref.dtype)


def prepare_decoder_params(w_dec, b_dec, w_proj, b_proj):
    """Pad weights to lane-dense (128-multiple) dims and cast matmul weights to
    bf16 ONCE (at parameter-init time); reuse across calls so this is not a
    per-invocation HBM pass."""
    H = w_dec.shape[0]
    O = w_proj.shape[1]
    Hp = _round_up(H, 128)
    Op = _round_up(O, 128)
    b_dec = jnp.reshape(b_dec, (1, -1)).astype(jnp.float32)    # accept (H,) or (1,H)
    b_proj = jnp.reshape(b_proj, (1, -1)).astype(jnp.float32)  # accept (O,) or (1,O)
    wd = jnp.pad(w_dec, ((0, Hp - H), (0, Hp - H))).astype(jnp.bfloat16)
    bd = jnp.pad(b_dec, ((0, 0), (0, Hp - H)))
    wp = jnp.pad(w_proj, ((0, Hp - H), (0, Op - O))).astype(jnp.bfloat16)
    bp = jnp.pad(b_proj, ((0, 0), (0, Op - O)))
    return dict(wd=wd, bd=bd, wp=wp, bp=bp, H=H, O=O, Hp=Hp, Op=Op)


def _vmem_budget_bytes():
    # Generation-aware ceiling: ~85% of physical VMEM (v7x 64 MiB, v5e/v6e
    # 128 MiB). Conservative 64 MiB fallback if the query is unavailable.
    try:
        cap = pltpu.get_tpu_info().vmem_capacity_bytes
    except Exception:
        cap = 64 * 2**20
    return int(cap * 0.85)


def _estimate_vmem(tm, hp, op):
    return (2 * tm * hp * 4            # x tiles (f32, double-buffered)
            + 2 * tm * op * 4          # out tiles (f32, double-buffered)
            + hp * hp * 2              # w_dec (bf16, single-buffered)
            + hp * op * 2              # w_proj (bf16, single-buffered)
            + 4 * (hp + op)            # biases (f32)
            + tm * hp * 4              # f32 hidden h
            + 2 * tm * (hp + op))      # in-kernel bf16 casts of x and h


def decoder_forward(x, params, *, tm=512):
    """forward(x) = project(decode(x)); x: [B, S, H] f32 -> [B, S, O] f32."""
    B, S, H = x.shape
    assert H == params["H"]
    O, Hp, Op = params["O"], params["Hp"], params["Op"]
    M = B * S

    # Stream x directly in f32 (no wrapper bf16 cast); pad H only if unaligned.
    x2d = x.reshape(M, H)
    if Hp != H:
        x2d = jnp.pad(x2d, ((0, 0), (0, Hp - H)))

    # Largest TM (multiple of 16) whose footprint fits the VMEM budget.
    budget = _vmem_budget_bytes()
    TM = max(16, min(tm, _round_up(M, 16)))
    while TM > 16 and _estimate_vmem(TM, Hp, Op) > budget:
        TM = max(16, _round_up(TM // 2, 16))
    est = _estimate_vmem(TM, Hp, Op)
    # TODO(synk): for very large H/O where the resident bf16 weights alone
    # exceed the budget (>~40 MiB on v7x), add N/K grid tiling of the weights
    # with a VMEM f32 accumulator + pl.when init/finalize instead.
    vmem_limit = int(min(budget, max(32 * 2**20, int(1.5 * est))))

    grid_m = pl.cdiv(M, TM)  # ragged last tile handled by Pallas edge masking

    out2d = pl.pallas_call(
        decoder_forward_kernel,
        out_shape=jax.ShapeDtypeStruct((M, Op), jnp.float32),
        grid_spec=pltpu.PrefetchScalarGridSpec(
            num_scalar_prefetch=0,
            grid=(grid_m,),
            in_specs=[
                # Activation tile: the only streamed operand (double-buffered).
                pl.BlockSpec((TM, Hp), lambda i: (i, 0)),
                # Constant-index operands: single-buffered, VMEM-resident.
                pl.BlockSpec((Hp, Hp), lambda i: (0, 0),
                             pipeline_mode=pl.Buffered(1)),
                pl.BlockSpec((1, Hp), lambda i: (0, 0),
                             pipeline_mode=pl.Buffered(1)),
                pl.BlockSpec((Hp, Op), lambda i: (0, 0),
                             pipeline_mode=pl.Buffered(1)),
                pl.BlockSpec((1, Op), lambda i: (0, 0),
                             pipeline_mode=pl.Buffered(1)),
            ],
            out_specs=pl.BlockSpec((TM, Op), lambda i: (i, 0)),
        ),
        compiler_params=pltpu.CompilerParams(
            dimension_semantics=("parallel",),  # megacore split of M on v7x
            vmem_limit_bytes=vmem_limit,
        ),
    )(x2d, params["wd"], params["bd"], params["wp"], params["bp"])

    if Op != O:
        out2d = out2d[:, :O]
    return out2d.reshape(B, S, O)


if __name__ == "__main__":
    B, S, H, O = 2, 8, 32, 16

    key = jax.random.PRNGKey(0)
    kx, kwd, kbd, kwp, kbp = jax.random.split(key, 5)

    x = jax.random.normal(kx, (B, S, H), dtype=jnp.float32)
    # Deterministic parameter init (scaled normal, fixed seeds).
    w_dec = jax.random.normal(kwd, (H, H), dtype=jnp.float32) * (1.0 / H**0.5)
    b_dec = jax.random.normal(kbd, (H,), dtype=jnp.float32) * 0.01
    w_proj = jax.random.normal(kwp, (H, O), dtype=jnp.float32) * (1.0 / H**0.5)
    b_proj = jax.random.normal(kbp, (O,), dtype=jnp.float32) * 0.01

    params = prepare_decoder_params(w_dec, b_dec, w_proj, b_proj)  # one-time
    out = decoder_forward(x, params)
    jax.block_until_ready(out)
    assert out.shape == (B, S, O)

    # Reference with matching numerics (bf16 matmul operands, f32 accumulate).
    x2d = x.reshape(B * S, H)
    h_ref = jnp.tanh(
        jnp.dot(x2d.astype(jnp.bfloat16), w_dec.astype(jnp.bfloat16),
                preferred_element_type=jnp.float32) + b_dec[None, :])
    ref = jnp.dot(h_ref.astype(jnp.bfloat16), w_proj.astype(jnp.bfloat16),
                  preferred_element_type=jnp.float32) + b_proj[None, :]
    ref = ref.reshape(B, S, O)
    assert jnp.allclose(out, ref, atol=2e-2, rtol=2e-2)

    # Sanity check against the pure-f32 reference with bf16-level tolerance.
    ref32 = (jnp.tanh(x2d @ w_dec + b_dec[None, :]) @ w_proj
             + b_proj[None, :]).reshape(B, S, O)
    assert jnp.allclose(out, ref32, atol=5e-2, rtol=5e-2)

    print("KERNEL_OK")
</pallas_src>

<mosaic_0001>
module attributes {stable_mosaic.version = 11 : i64} {
  func.func @decoder_forward_kernel(%arg0: i32, %arg1: memref<16x128xf32, #tpu.memory_space<vmem>>, %arg2: memref<128x128xbf16, #tpu.memory_space<vmem>>, %arg3: memref<1x128xf32, #tpu.memory_space<vmem>>, %arg4: memref<128x128xbf16, #tpu.memory_space<vmem>>, %arg5: memref<1x128xf32, #tpu.memory_space<vmem>>, %arg6: memref<16x128xf32, #tpu.memory_space<vmem>>) attributes {dimension_semantics = [#tpu.dimension_semantics<parallel>], iteration_bounds = array<i64: 1>, scalar_prefetch = 0 : i64, scratch_operands = 0 : i64, tpu.core_type = #tpu.core_type<tc>, window_params = [{transform_indices = @transform_0, window_bounds = array<i64: 16, 128>}, {pipeline_mode = #tpu.pipeline_mode<synchronous>, transform_indices = @transform_1, window_bounds = array<i64: 128, 128>}, {pipeline_mode = #tpu.pipeline_mode<synchronous>, transform_indices = @transform_2, window_bounds = array<i64: 1, 128>}, {pipeline_mode = #tpu.pipeline_mode<synchronous>, transform_indices = @transform_3, window_bounds = array<i64: 128, 128>}, {pipeline_mode = #tpu.pipeline_mode<synchronous>, transform_indices = @transform_4, window_bounds = array<i64: 1, 128>}, {transform_indices = @transform_5, window_bounds = array<i64: 16, 128>}]} {
    %c0 = arith.constant 0 : index
    %c0_0 = arith.constant 0 : index
    %0 = vector.load %arg1[%c0, %c0_0] : memref<16x128xf32, #tpu.memory_space<vmem>>, vector<16x128xf32>
    %1 = arith.truncf %0 : vector<16x128xf32> to vector<16x128xbf16>
    %c0_1 = arith.constant 0 : index
    %c0_2 = arith.constant 0 : index
    %2 = vector.load %arg2[%c0_1, %c0_2] : memref<128x128xbf16, #tpu.memory_space<vmem>>, vector<128x128xbf16>
    %cst = arith.constant dense<0.000000e+00> : vector<16x128xf32>
    %3 = tpu.matmul %1, %2, %cst {dimension_numbers = #tpu.dot_dimension_numbers<[1], [0], [0], [1], [0, 0, 1, 1], [], []>} : vector<16x128xbf16>, vector<128x128xbf16>, vector<16x128xf32> -> vector<16x128xf32>
    %c0_3 = arith.constant 0 : index
    %c0_4 = arith.constant 0 : index
    %4 = vector.load %arg3[%c0_3, %c0_4] : memref<1x128xf32, #tpu.memory_space<vmem>>, vector<1x128xf32>
    %5 = vector.broadcast %4 : vector<1x128xf32> to vector<16x128xf32>
    %6 = arith.addf %3, %5 : vector<16x128xf32>
    %7 = math.tanh %6 : vector<16x128xf32>
    %8 = arith.truncf %7 : vector<16x128xf32> to vector<16x128xbf16>
    %c0_5 = arith.constant 0 : index
    %c0_6 = arith.constant 0 : index
    %9 = vector.load %arg4[%c0_5, %c0_6] : memref<128x128xbf16, #tpu.memory_space<vmem>>, vector<128x128xbf16>
    %cst_7 = arith.constant dense<0.000000e+00> : vector<16x128xf32>
    %10 = tpu.matmul %8, %9, %cst_7 {dimension_numbers = #tpu.dot_dimension_numbers<[1], [0], [0], [1], [0, 0, 1, 1], [], []>} : vector<16x128xbf16>, vector<128x128xbf16>, vector<16x128xf32> -> vector<16x128xf32>
    %c0_8 = arith.constant 0 : index
    %c0_9 = arith.constant 0 : index
    %11 = vector.load %arg5[%c0_8, %c0_9] : memref<1x128xf32, #tpu.memory_space<vmem>>, vector<1x128xf32>
    %12 = vector.broadcast %11 : vector<1x128xf32> to vector<16x128xf32>
    %13 = arith.addf %10, %12 : vector<16x128xf32>
    %c0_10 = arith.constant 0 : index
    %c0_11 = arith.constant 0 : index
    %14 = vector.load %arg6[%c0_10, %c0_11] : memref<16x128xf32, #tpu.memory_space<vmem>>, vector<16x128xf32>
    tpu.vector_store %arg6[%c0_10, %c0_11], %13 {strides = array<i32>} : memref<16x128xf32, #tpu.memory_space<vmem>>, vector<16x128xf32>,
    return
  }
  func.func @transform_0(%arg0: i32) -> (i32, i32) {
    %c0_i32 = arith.constant 0 : i32
    %c0_i32_0 = arith.constant 0 : i32
    return %arg0, %c0_i32 : i32, i32
  }
  func.func @transform_1(%arg0: i32) -> (i32, i32) {
    %c0_i32 = arith.constant 0 : i32
    %c0_i32_0 = arith.constant 0 : i32
    %c0_i32_1 = arith.constant 0 : i32
    return %c0_i32, %c0_i32_0 : i32, i32
  }
  func.func @transform_2(%arg0: i32) -> (i32, i32) {
    %c0_i32 = arith.constant 0 : i32
    %c0_i32_0 = arith.constant 0 : i32
    %c0_i32_1 = arith.constant 0 : i32
    return %c0_i32, %c0_i32_0 : i32, i32
  }
  func.func @transform_3(%arg0: i32) -> (i32, i32) {
    %c0_i32 = arith.constant 0 : i32
    %c0_i32_0 = arith.constant 0 : i32
    %c0_i32_1 = arith.constant 0 : i32
    return %c0_i32, %c0_i32_0 : i32, i32
  }
  func.func @transform_4(%arg0: i32) -> (i32, i32) {
    %c0_i32 = arith.constant 0 : i32
    %c0_i32_0 = arith.constant 0 : i32
    %c0_i32_1 = arith.constant 0 : i32
    return %c0_i32, %c0_i32_0 : i32, i32
  }
  func.func @transform_5(%arg0: i32) -> (i32, i32) {
    %c0_i32 = arith.constant 0 : i32
    %c0_i32_0 = arith.constant 0 : i32
    return %arg0, %c0_i32 : i32, i32
  }
}

</mosaic_0001>

<bundles_post_ra>
// kernel: tpu_custom_call.1
= control target key start
LH: loop header
LB: loop body
LE: loop exit
PB: predicated region body
PF: predicated region fallthrough
CT: control target
= control target key end

     0   :  { %10 = vsyncpa [#allocation3], 0  ;;  %s518_s0 = inlined_call_operand.hbm [shape: f32[16,128], index: 0, kind: input, shape index: {}]   ;;  %s519_s1 = inlined_call_operand.hbm [shape: bf16[128,128], index: 1, kind: input, shape index: {}]   ;;  %s520_s2 = inlined_call_operand.vmem [shape: f32[1,128], index: 2, kind: input, shape index: {}]   ;;  %s521_s3 = inlined_call_operand.hbm [shape: bf16[128,128], index: 3, kind: input, shape index: {}]   ;;  %s522_s4 = inlined_call_operand.vmem [shape: f32[1,128], index: 4, kind: input, shape index: {}]   ;;  %s523_s5 = inlined_call_operand.hbm [shape: f32[16,128], index: 5, kind: output, shape index: {}]  }
   0x1   :  { %11 = vsyncpa [#allocation6], 0  ;;  %s30_s20 = sshll.u32 %s519_s1, 4  ;;  %s31_s20 = int_to_ptr.hbm [resolvable:$true] %s30_s20 }
   0x2   :  { %12 = vsyncpa [#allocation4], 0  ;;  %s456_s21 = smov [#allocation5]   ;;  %s17_s25 = sshll.u32 %s518_s0, 4  ;;  %s18_s25 = int_to_ptr.hbm [resolvable:$true] %s17_s25 }
   0x3   :  { %s32_s22 = sshll.u32 %s456_s21, 4  ;;  %s457_s26 = smov 64   ;;  %s33_s22 = int_to_ptr.vmem [resolvable:$true] %s32_s22 }
   0x4   :  { %s458_s27 = smov 4   ;;  %s459_s28 = smov [#allocation2]  }
   0x5   :  { %38 = dma.hbm_to_vmem [thread:$0]  %s31_s20, 1024, %s33_s22, [#allocation6], %s457_s26, %s457_s26, %s458_s27  }
   0x6   :  { %s19_s29 = sshll.u32 %s459_s28, 4  ;;  %s460_s30 = smov 128   ;;  %s20_s29 = int_to_ptr.vmem [resolvable:$true] %s19_s29 }
   0x7   :  { %s461_s6 = smov 8   ;;  %s45_s8 = sshll.u32 %s521_s3, 4  ;;  %s46_s8 = int_to_ptr.hbm [resolvable:$true] %s45_s8 }
   0x8   :  { %25 = dma.hbm_to_vmem [thread:$0]  %s18_s25, 256, %s20_s29, [#allocation3], %s460_s30, %s460_s30, %s461_s6  }
   0x9   :  { %s462_s9 = smov [#allocation7]  }
   0xa   :  { %s47_s0 = sshll.u32 %s462_s9, 4  ;;  %s48_s0 = int_to_ptr.vmem [resolvable:$true] %s47_s0 }
   0xb   :  { %53 = dma.hbm_to_vmem [thread:$0]  %s46_s8, 1024, %s48_s0, [#allocation6], %s457_s26, %s457_s26, %s458_s27  }
   0xc   :  { %450 = dma.done.wait [#allocation3], 256  }
   0xd   :  { %451 = vsyncadd [#allocation3], 4294967040 }
   0xe   :  { %452 = dma.done.wait [#allocation6], 2048  }
   0xf   :  { %453 = vsyncadd [#allocation6], 4294965248  ;;  %v331_v0 = vld [vmem:[#allocation5 + $0x38] sm:$0xff]  ;;  %v330_v1 = vld [vmem:[#allocation5 + $0x30] sm:$0xff]  ;;  %s463_s13 = smov [#allocation8]   ;;  %s246_s16 = sshll.u32 %s523_s5, 4  ;;  %s247_s16 = int_to_ptr.hbm [resolvable:$true] %s246_s16 }
  0x10   :  { %139 = vmatpush.bf16.msra.mxu0 %v331_v0  ;;  %v339_v2 = vld [vmem:[#allocation7 + $0x38] sm:$0xff]  ;;  %v338_v3 = vld [vmem:[#allocation7 + $0x30] sm:$0xff]  ;;  %v329_v4 = vld [vmem:[#allocation5 + $0x28] sm:$0xff]  ;;  %s244_s14 = sshll.u32 %s463_s13, 4  ;;  %s245_s14 = int_to_ptr.vmem [resolvable:$true] %s244_s14 }
  0x11   :  { %224 = vmatpush.bf16.msra.mxu1 %v339_v2  ;;  %v337_v5 = vld [vmem:[#allocation7 + $0x28] sm:$0xff]  ;;  %v328_v6 = vld [vmem:[#allocation5 + $0x20] sm:$0xff]  ;;  %v327_v7 = vld [vmem:[#allocation5 + $0x18] sm:$0xff] }
  0x12   :  { %v326_v8 = vld [vmem:[#allocation5 + $0x10] sm:$0xff]  ;;  %v325_v9 = vld [vmem:[#allocation5 + $0x8] sm:$0xff]  ;;  %v324_v10 = vld [vmem:[#allocation5] sm:$0xff] }
  0x13   :  { %v68_v11 = vld [vmem:[#allocation2] sm:$0xff]  ;;  %v69_v12 = vld [vmem:[#allocation2 + $0x8] sm:$0xff]  ;;  %v336_v14 = vld [vmem:[#allocation7 + $0x20] sm:$0xff] }
  0x14   :  { %140 = vmatpush.bf16.msra.mxu0 %v330_v1  ;;  %v70_v13 = vpack.c.bf16 %v69_v12, %v68_v11  ;;  %v335_v15 = vld [vmem:[#allocation7 + $0x18] sm:$0xff]  ;;  %v334_v16 = vld [vmem:[#allocation7 + $0x10] sm:$0xff]  ;;  %v333_v17 = vld [vmem:[#allocation7 + $0x8] sm:$0xff] }
  0x15   :  { %225 = vmatpush.bf16.msra.mxu1 %v338_v3  ;;  %v332_v18 = vld [vmem:[#allocation7] sm:$0xff]  ;;  %v348_v20 = vld [vmem:[%s520_s2] ss:$0 sm:$0xff] }
  0x16   :  { %v349_v27 = vld [vmem:[%s522_s4] ss:$0 sm:$0xff] }
  0x18   :  { %141 = vmatpush.bf16.msra.mxu0 %v329_v4 }
  0x19   :  { %226 = vmatpush.bf16.msra.mxu1 %v337_v5 }
  0x1c   :  { %142 = vmatpush.bf16.msra.mxu0 %v328_v6 }
  0x1d   :  { %227 = vmatpush.bf16.msra.mxu1 %v336_v14 }
  0x20   :  { %143 = vmatpush.bf16.msra.mxu0 %v327_v7 }
  0x21   :  { %228 = vmatpush.bf16.msra.mxu1 %v335_v15 }
  0x24   :  { %144 = vmatpush.bf16.msra.mxu0 %v326_v8 }
  0x25   :  { %229 = vmatpush.bf16.msra.mxu1 %v334_v16 }
  0x28   :  { %145 = vmatpush.bf16.msra.mxu0 %v325_v9 }
  0x29   :  { %230 = vmatpush.bf16.msra.mxu1 %v333_v17 }
  0x2c   :  { %146 = vmatpush.bf16.msra.mxu0 %v324_v10 }
  0x2d   :  { %231 = vmatpush.bf16.msra.mxu1 %v332_v18 }
  0x2f   :  { %147 = vmatmul.bf16.vlgmr.msra.gmra.mxu0 %v70_v13 }
  0xac   :  { %v148_v19 = vpop.f32.mrf.mxu0 }
  0xad   :  { %v149_v21 = vadd.f32 %v348_v20, %v148_v19 }
  0xaf   :  { %350 = vtanh.f32 %v149_v21 }
  0xb4   :  { %v150_v22 = vpop.f32.mrf.mxu0 }
  0xb5   :  { %v151_v23 = vadd.f32 %v348_v20, %v150_v22  ;;  %v351_v24 = vpop.eup %350 }
  0xb7   :  { %352 = vtanh.f32 %v151_v23 }
  0xbd   :  { %v353_v25 = vpop.eup %352 }
  0xbe   :  { %v155_v26 = vpack.c.bf16 %v353_v25, %v351_v24 }
  0xc0   :  { %232 = vmatmul.bf16.vlgmr.msra.gmra.mxu1 %v155_v26 }
 0x13d   :  { %v233_v28 = vpop.f32.mrf.mxu1 }
 0x13e   :  { %v234_v29 = vadd.f32 %v349_v27, %v233_v28 }
 0x140   :  { %238 = vst [vmem:[#allocation8] sm:$0xff] %v234_v29 }
 0x145   :  { %v235_v30 = vpop.f32.mrf.mxu1 }
 0x146   :  { %v236_v31 = vadd.f32 %v349_v27, %v235_v30 }
 0x148   :  { %239 = vst [vmem:[#allocation8 + $0x8] sm:$0xff] %v236_v31 }
 0x149   :  { %252 = dma.vmem_to_hbm [thread:$0]  %s245_s14, 256, %s247_s16, [#allocation4], %s460_s30, %s460_s30, %s461_s6  }
 0x14a   :  { %454 = dma.done.wait [#allocation4], 256  }
 0x14b   :  { %455 = vsyncadd [#allocation4], 4294967040 }
 0x14c   :  { %257 = vsyncpa [#allocation3], 1 }
 0x14d   :  { %258 = vsyncpa [#allocation6], 1 }
 0x14e   :  { %259 = vsyncpa [#allocation4], 1 }

</bundles_post_ra>
